<compile_context>
chip_gen: v7x
topology: tpu7x:2x2x1
jax: 0.10.0
libtpu: 0.0.40
codegen_flags: <defaults>
</compile_context>

<pallas_src>
import functools

import jax
import jax.numpy as jnp
import numpy as np
from jax.experimental import pallas as pl
from jax.experimental.pallas import tpu as pltpu


def _round_up(x, m):
    return (x + m - 1) // m * m


def _vmem_limit_bytes():
    cap = 64 * 1024 * 1024                    # conservative default (v7x per-core VMEM)
    try:
        info = pltpu.get_tpu_info()
        cap = int(getattr(info, "vmem_capacity_bytes", cap))
    except Exception:
        pass
    return min(cap * 3 // 4, 96 * 1024 * 1024)


def _choose_tile(hw, c, in_itemsize, vmem_limit):
    # Budget the real VMEM drivers: double-buffered input blocks plus ~8 f32
    # (C, tile) temporaries alive through the softmax / contribution stages.
    budget = int(vmem_limit * 0.7)
    per_lane = 2 * (c * in_itemsize + 4) + 8 * c * 4
    tile = max(128, (budget // per_lane) // 128 * 128)
    # Bound temporary / vreg pressure: keep C * tile_p at roughly <= 1M elements.
    elems_cap = max(128, ((1 << 20) // max(c, 1)) // 128 * 128)
    tile = min(tile, elems_cap, 16384)
    return min(tile, _round_up(hw, 128))


def _lane_fold(x, width=128):
    # x: (..., tile_p), tile_p a multiple of 128.  Sum aligned 128-lane slices
    # into a (..., 128) strip.  Slices are static & aligned -> stay in vregs.
    tile_p = x.shape[-1]
    acc = x[..., 0:width]
    for k in range(1, tile_p // width):
        acc = acc + x[..., k * width:(k + 1) * width]
    return acc


def ce_dice_kernel(labels_ref, logits_ref, ce_ref, inter_ref, denom_ref,
                   *, hw_total, tile_p, num_blocks, steps_per_split, num_splits):
    s = pl.program_id(1)
    j = pl.program_id(2)
    gj = s * steps_per_split + j          # global pixel-block index

    # Zero the per-(batch, split) resident accumulators at the start of a sweep.
    @pl.when(j == 0)
    def _():
        ce_ref[...] = jnp.zeros_like(ce_ref)
        inter_ref[...] = jnp.zeros_like(inter_ref)
        denom_ref[...] = jnp.zeros_like(denom_ref)

    logits = logits_ref[...].astype(jnp.float32)     # (1, C, TP)  cast in VMEM
    labels = labels_ref[...]                         # (1, 1, TP)  int32
    num_classes = logits.shape[1]

    # Numerically-stable softmax / logsumexp along the class (sublane) axis.
    m = jnp.max(logits, axis=1, keepdims=True)                   # (1, 1, TP)
    e = jnp.exp(logits - m)                                      # (1, C, TP)
    z = jnp.sum(e, axis=1, keepdims=True)                        # (1, 1, TP)
    probs = e * (1.0 / z)                # exact reciprocal on the tiny slab
    lse = m + jnp.log(z)                                         # (1, 1, TP)

    # One-hot as a boolean mask; loop-invariant class ids stay (1, C, 1) and are
    # broadcast over lanes by the compare (no full-size int32 iota per step).
    cls_ids = jax.lax.broadcasted_iota(jnp.int32, (1, num_classes, 1), 1)
    match = cls_ids == labels                                    # (1, C, TP)

    logit_true = jnp.sum(jnp.where(match, logits, 0.0), axis=1, keepdims=True)
    ce_contrib = lse - logit_true                                # (1, 1, TP)
    inter_contrib = jnp.where(match, probs, 0.0)                 # (1, C, TP)
    # Dice only ever uses sum(p) + sum(t): fuse into one accumulator.
    denom_contrib = probs + match.astype(jnp.float32)            # (1, C, TP)

    def accumulate(cec, ic, dc):
        # Lane-fold each contribution to a 128-lane strip in vregs, then one
        # narrow RMW per accumulator (vs. full-width `+=` on (C, tile_p)).
        ce_ref[...] += _lane_fold(cec)
        inter_ref[...] += _lane_fold(ic)
        denom_ref[...] += _lane_fold(dc)

    full_cover = (num_splits * steps_per_split == num_blocks
                  and num_blocks * tile_p == hw_total)
    if full_cover:
        accumulate(ce_contrib, inter_contrib, denom_contrib)
    else:
        partial = (gj + 1) * tile_p > hw_total   # scalar: partial or overhanging block

        @pl.when(jnp.logical_not(partial))
        def _():  # fast path: no masking for full tiles
            accumulate(ce_contrib, inter_contrib, denom_contrib)

        @pl.when(partial)
        def _():
            # Mask EVERY contribution: lanes past hw_total hold garbage (possibly
            # NaN/Inf after exp) and must never reach the accumulators.
            pos = jax.lax.broadcasted_iota(jnp.int32, (1, 1, tile_p), 2)
            valid = (gj * tile_p + pos) < hw_total               # (1, 1, TP)
            accumulate(jnp.where(valid, ce_contrib, 0.0),
                       jnp.where(valid, inter_contrib, 0.0),
                       jnp.where(valid, denom_contrib, 0.0))


def _ce_dice_partial_sums(logits_ncp, labels_n1p):
    N, C, HW = logits_ncp.shape
    vmem_limit = _vmem_limit_bytes()
    tile_p = _choose_tile(HW, C, logits_ncp.dtype.itemsize, vmem_limit)
    num_blocks = pl.cdiv(HW, tile_p)
    # Split the pixel sweep in two when N is odd so both v7x TensorCores get work
    # even for N == 1 (pure relabeling on single-TC v5e/v6e).
    num_splits = 2 if (N % 2 == 1) else 1
    steps_per_split = pl.cdiv(num_blocks, num_splits)
    grid = (N, num_splits, steps_per_split)

    kernel = functools.partial(
        ce_dice_kernel, hw_total=HW, tile_p=tile_p, num_blocks=num_blocks,
        steps_per_split=steps_per_split, num_splits=num_splits)

    def in_idx(n, s, j):
        # Clamp so overhanging blocks of the second split stay in-bounds; their
        # contributions are fully masked inside the kernel.
        return (n, 0, jnp.minimum(s * steps_per_split + j, num_blocks - 1))

    def out_idx(n, s, j):
        return (n * num_splits + s, 0, 0)

    out_shape = (
        jax.ShapeDtypeStruct((N * num_splits, 1, 128), jnp.float32),   # CE partials
        jax.ShapeDtypeStruct((N * num_splits, C, 128), jnp.float32),   # sum(p*t)
        jax.ShapeDtypeStruct((N * num_splits, C, 128), jnp.float32),   # sum(p)+sum(t)
    )
    cost = pl.CostEstimate(
        flops=12 * N * C * HW,
        transcendentals=N * C * HW,
        bytes_accessed=(logits_ncp.size * logits_ncp.dtype.itemsize
                        + labels_n1p.size * 4
                        + sum(int(np.prod(o.shape)) * 4 for o in out_shape)))

    return pl.pallas_call(
        kernel,
        out_shape=out_shape,
        grid_spec=pltpu.PrefetchScalarGridSpec(
            num_scalar_prefetch=0,
            grid=grid,
            in_specs=[
                pl.BlockSpec((1, 1, tile_p), in_idx),   # labels  [N, 1, HW]
                pl.BlockSpec((1, C, tile_p), in_idx),   # logits  [N, C, HW]
            ],
            out_specs=[
                pl.BlockSpec((1, 1, 128), out_idx),
                pl.BlockSpec((1, C, 128), out_idx),
                pl.BlockSpec((1, C, 128), out_idx),
            ],
        ),
        compiler_params=pltpu.CompilerParams(
            dimension_semantics=("parallel", "parallel", "arbitrary"),
            vmem_limit_bytes=vmem_limit,
        ),
        cost_estimate=cost,
    )(labels_n1p, logits_ncp)


def ce_dice_loss(outputs, labels, config):
    """outputs: [N, C, H, W] float logits (any float dtype); labels: [N, H, W] ints."""
    config = dict(config)
    config.setdefault("ce_lamda", 1.0)
    smooth = jnp.float32(config.get("smooth", 1.0))

    N, C, H, W = outputs.shape
    HW = H * W
    # Free, contiguous reshapes (no HBM transpose, no wrapper-side upcast).
    logits_ncp = outputs.reshape(N, C, HW)
    labels_n1p = labels.reshape(N, 1, HW).astype(jnp.int32)

    ce_acc, inter_acc, denom_acc = _ce_dice_partial_sums(logits_ncp, labels_n1p)

    # Tiny final reductions (glue).
    ce_total = jnp.sum(ce_acc) / jnp.float32(N * HW)
    inter_c = jnp.sum(inter_acc, axis=(0, 2))          # [C]
    denom_c = jnp.sum(denom_acc, axis=(0, 2))          # [C] = sum(p) + sum(t)
    dice_c = (2.0 * inter_c + smooth) / (denom_c + smooth)
    dice_total = 1.0 - jnp.mean(dice_c)

    if config["ce_lamda"] == 0:
        return {"total_loss": dice_total, "main_loss": dice_total,
                "aux_loss": dice_total}
    total = config["ce_lamda"] * ce_total + config["dice_lamda"] * dice_total
    return {"total_loss": total, "main_loss": ce_total, "aux_loss": dice_total}


def _reference_numpy(outputs, labels, config):
    """Pure-numpy reference of the same semantics (silent sanity check)."""
    x = np.asarray(outputs, np.float64)           # [N,C,H,W]
    y = np.asarray(labels, np.int64)              # [N,H,W]
    N, C, H, W = x.shape
    lo = np.transpose(x, (1, 0, 2, 3)).reshape(C, -1)   # [C,P]
    lb = y.reshape(-1)                                   # [P]
    m = lo.max(0, keepdims=True)
    e = np.exp(lo - m)
    s = e.sum(0, keepdims=True)
    probs = e / s
    lse = (m + np.log(s))[0]
    ce = (lse - lo[lb, np.arange(lo.shape[1])]).mean()
    onehot = (np.arange(C)[:, None] == lb[None, :]).astype(np.float64)
    smooth = float(config.get("smooth", 1.0))
    inter = (probs * onehot).sum(1)
    dice = (2 * inter + smooth) / (probs.sum(1) + onehot.sum(1) + smooth)
    dice_loss = 1.0 - dice.mean()
    return config.get("ce_lamda", 1.0) * ce + config["dice_lamda"] * dice_loss


if __name__ == "__main__":
    config = {"ce_lamda": 1.0, "dice_lamda": 1.0}
    key = jax.random.PRNGKey(0)

    # Case 1: clean tile division, f32 logits (static unmasked fast path).
    k1, k2 = jax.random.split(key)
    N, C, H, W = 2, 4, 16, 16
    outputs = jax.random.normal(k1, (N, C, H, W), dtype=jnp.float32)
    labels = jax.random.randint(k2, (N, H, W), 0, C, dtype=jnp.int32)
    result = ce_dice_loss(outputs, labels, config)
    jax.block_until_ready(result["total_loss"])
    ref_total = _reference_numpy(np.array(outputs), np.array(labels), config)
    np.testing.assert_allclose(float(result["total_loss"]), ref_total,
                               rtol=2e-3, atol=2e-3)

    # Case 2: H*W not a multiple of the lane tile (exercises the partial-tile mask).
    k3, k4 = jax.random.split(k1)
    H2, W2 = 16, 15
    outputs2 = jax.random.normal(k3, (N, C, H2, W2), dtype=jnp.float32)
    labels2 = jax.random.randint(k4, (N, H2, W2), 0, C, dtype=jnp.int32)
    result2 = ce_dice_loss(outputs2, labels2, config)
    jax.block_until_ready(result2["total_loss"])
    ref_total2 = _reference_numpy(np.array(outputs2), np.array(labels2), config)
    np.testing.assert_allclose(float(result2["total_loss"]), ref_total2,
                               rtol=2e-3, atol=2e-3)

    # Case 3: native bf16 logits fed straight to the kernel (in-VMEM upcast path).
    outputs_bf16 = outputs.astype(jnp.bfloat16)
    result3 = ce_dice_loss(outputs_bf16, labels, config)
    jax.block_until_ready(result3["total_loss"])
    ref_total3 = _reference_numpy(
        np.array(outputs_bf16.astype(jnp.float32)), np.array(labels), config)
    np.testing.assert_allclose(float(result3["total_loss"]), ref_total3,
                               rtol=5e-3, atol=5e-3)

    # Case 4: N=1 (odd) -> megacore pixel split with a fully-masked overhanging block.
    k5, k6 = jax.random.split(k3)
    N4, C4 = 1, 5
    outputs4 = jax.random.normal(k5, (N4, C4, 16, 16), dtype=jnp.float32)
    labels4 = jax.random.randint(k6, (N4, 16, 16), 0, C4, dtype=jnp.int32)
    result4 = ce_dice_loss(outputs4, labels4, config)
    jax.block_until_ready(result4["total_loss"])
    ref_total4 = _reference_numpy(np.array(outputs4), np.array(labels4), config)
    np.testing.assert_allclose(float(result4["total_loss"]), ref_total4,
                               rtol=2e-3, atol=2e-3)

    print("KERNEL_OK")
</pallas_src>

<mosaic_0001>
module attributes {stable_mosaic.version = 11 : i64} {
  func.func @ce_dice_kernel(%arg0: i32, %arg1: i32, %arg2: i32, %arg3: memref<1x1x256xi32, #tpu.memory_space<vmem>>, %arg4: memref<1x4x256xf32, #tpu.memory_space<vmem>>, %arg5: memref<1x1x128xf32, #tpu.memory_space<vmem>>, %arg6: memref<1x4x128xf32, #tpu.memory_space<vmem>>, %arg7: memref<1x4x128xf32, #tpu.memory_space<vmem>>) attributes {dimension_semantics = [#tpu.dimension_semantics<parallel>, #tpu.dimension_semantics<parallel>, #tpu.dimension_semantics<arbitrary>], iteration_bounds = array<i64: 2, 1, 1>, scalar_prefetch = 0 : i64, scratch_operands = 0 : i64, tpu.core_type = #tpu.core_type<tc>, window_params = [{transform_indices = @transform_0, window_bounds = array<i64: 1, 1, 256>}, {transform_indices = @transform_1, window_bounds = array<i64: 1, 4, 256>}, {transform_indices = @transform_2, window_bounds = array<i64: 1, 1, 128>}, {transform_indices = @transform_3, window_bounds = array<i64: 1, 4, 128>}, {transform_indices = @transform_4, window_bounds = array<i64: 1, 4, 128>}]} {
    %c0_i32 = arith.constant 0 : i32
    %0 = arith.cmpi eq, %arg2, %c0_i32 : i32
    %1 = arith.extui %0 : i1 to i32
    %c0_i32_0 = arith.constant 0 : i32
    %2 = arith.cmpi ne, %1, %c0_i32_0 : i32
    scf.if %2 {
      %cst_29 = arith.constant 0.000000e+00 : f32
      %50 = vector.broadcast %cst_29 : f32 to vector<1x1x128xf32>
      %c0_30 = arith.constant 0 : index
      %c0_31 = arith.constant 0 : index
      %c0_32 = arith.constant 0 : index
      %51 = vector.load %arg5[%c0_30, %c0_31, %c0_32] : memref<1x1x128xf32, #tpu.memory_space<vmem>>, vector<1x1x128xf32>
      tpu.vector_store %arg5[%c0_30, %c0_31, %c0_32], %50 {strides = array<i32>} : memref<1x1x128xf32, #tpu.memory_space<vmem>>, vector<1x1x128xf32>,
      %cst_33 = arith.constant 0.000000e+00 : f32
      %52 = vector.broadcast %cst_33 : f32 to vector<1x4x128xf32>
      %c0_34 = arith.constant 0 : index
      %c0_35 = arith.constant 0 : index
      %c0_36 = arith.constant 0 : index
      %53 = vector.load %arg6[%c0_34, %c0_35, %c0_36] : memref<1x4x128xf32, #tpu.memory_space<vmem>>, vector<1x4x128xf32>
      tpu.vector_store %arg6[%c0_34, %c0_35, %c0_36], %52 {strides = array<i32>} : memref<1x4x128xf32, #tpu.memory_space<vmem>>, vector<1x4x128xf32>,
      %cst_37 = arith.constant 0.000000e+00 : f32
      %54 = vector.broadcast %cst_37 : f32 to vector<1x4x128xf32>
      %c0_38 = arith.constant 0 : index
      %c0_39 = arith.constant 0 : index
      %c0_40 = arith.constant 0 : index
      %55 = vector.load %arg7[%c0_38, %c0_39, %c0_40] : memref<1x4x128xf32, #tpu.memory_space<vmem>>, vector<1x4x128xf32>
      tpu.vector_store %arg7[%c0_38, %c0_39, %c0_40], %54 {strides = array<i32>} : memref<1x4x128xf32, #tpu.memory_space<vmem>>, vector<1x4x128xf32>,
    } else {
    }
    %c0 = arith.constant 0 : index
    %c0_1 = arith.constant 0 : index
    %c0_2 = arith.constant 0 : index
    %3 = vector.load %arg4[%c0, %c0_1, %c0_2] : memref<1x4x256xf32, #tpu.memory_space<vmem>>, vector<1x4x256xf32>
    %c0_3 = arith.constant 0 : index
    %c0_4 = arith.constant 0 : index
    %c0_5 = arith.constant 0 : index
    %4 = vector.load %arg3[%c0_3, %c0_4, %c0_5] : memref<1x1x256xi32, #tpu.memory_space<vmem>>, vector<1x1x256xi32>
    %cst = arith.constant dense<0xFF800000> : vector<1x256xf32>
    %5 = vector.multi_reduction <maximumf>, %3, %cst [1] : vector<1x4x256xf32> to vector<1x256xf32>
    %6 = vector.shape_cast %5 : vector<1x256xf32> to vector<1x1x256xf32>
    %7 = vector.broadcast %6 : vector<1x1x256xf32> to vector<1x4x256xf32>
    %8 = arith.subf %3, %7 : vector<1x4x256xf32>
    %9 = math.exp %8 : vector<1x4x256xf32>
    %cst_6 = arith.constant dense<0.000000e+00> : vector<1x256xf32>
    %10 = vector.multi_reduction <add>, %9, %cst_6 [1] : vector<1x4x256xf32> to vector<1x256xf32>
    %11 = vector.shape_cast %10 : vector<1x256xf32> to vector<1x1x256xf32>
    %cst_7 = arith.constant 1.000000e+00 : f32
    %12 = vector.broadcast %cst_7 : f32 to vector<1x1x256xf32>
    %13 = arith.divf %12, %11 : vector<1x1x256xf32>
    %14 = vector.broadcast %13 : vector<1x1x256xf32> to vector<1x4x256xf32>
    %15 = arith.mulf %9, %14 : vector<1x4x256xf32>
    %16 = math.log %11 : vector<1x1x256xf32>
    %17 = arith.addf %6, %16 : vector<1x1x256xf32>
    %18 = tpu.iota {dimensions = array<i32: 1>} : vector<1x4x1xi32>
    %19 = vector.broadcast %18 : vector<1x4x1xi32> to vector<1x4x256xi32>
    %20 = vector.broadcast %4 : vector<1x1x256xi32> to vector<1x4x256xi32>
    %21 = arith.cmpi eq, %19, %20 : vector<1x4x256xi32>
    %cst_8 = arith.constant 0.000000e+00 : f32
    %22 = vector.broadcast %cst_8 : f32 to vector<1x4x256xf32>
    %23 = arith.select %21, %3, %22 : vector<1x4x256xi1>, vector<1x4x256xf32>
    %cst_9 = arith.constant dense<0.000000e+00> : vector<1x256xf32>
    %24 = vector.multi_reduction <add>, %23, %cst_9 [1] : vector<1x4x256xf32> to vector<1x256xf32>
    %25 = vector.shape_cast %24 : vector<1x256xf32> to vector<1x1x256xf32>
    %26 = arith.subf %17, %25 : vector<1x1x256xf32>
    %cst_10 = arith.constant 0.000000e+00 : f32
    %27 = vector.broadcast %cst_10 : f32 to vector<1x4x256xf32>
    %28 = arith.select %21, %15, %27 : vector<1x4x256xi1>, vector<1x4x256xf32>
    %29 = arith.extui %21 : vector<1x4x256xi1> to vector<1x4x256xi32>
    %30 = arith.sitofp %29 : vector<1x4x256xi32> to vector<1x4x256xf32>
    %31 = arith.addf %15, %30 : vector<1x4x256xf32>
    %c0_11 = arith.constant 0 : index
    %c0_12 = arith.constant 0 : index
    %c0_13 = arith.constant 0 : index
    %32 = vector.load %arg5[%c0_11, %c0_12, %c0_13] : memref<1x1x128xf32, #tpu.memory_space<vmem>>, vector<1x1x128xf32>
    %33 = vector.extract_strided_slice %26 {offsets = [0, 0, 0], sizes = [1, 1, 128], strides = [1, 1, 1]} : vector<1x1x256xf32> to vector<1x1x128xf32>
    %34 = vector.extract_strided_slice %26 {offsets = [0, 0, 128], sizes = [1, 1, 128], strides = [1, 1, 1]} : vector<1x1x256xf32> to vector<1x1x128xf32>
    %35 = arith.addf %33, %34 : vector<1x1x128xf32>
    %36 = arith.addf %32, %35 : vector<1x1x128xf32>
    %c0_14 = arith.constant 0 : index
    %c0_15 = arith.constant 0 : index
    %c0_16 = arith.constant 0 : index
    %37 = vector.load %arg5[%c0_14, %c0_15, %c0_16] : memref<1x1x128xf32, #tpu.memory_space<vmem>>, vector<1x1x128xf32>
    tpu.vector_store %arg5[%c0_14, %c0_15, %c0_16], %36 {strides = array<i32>} : memref<1x1x128xf32, #tpu.memory_space<vmem>>, vector<1x1x128xf32>,
    %c0_17 = arith.constant 0 : index
    %c0_18 = arith.constant 0 : index
    %c0_19 = arith.constant 0 : index
    %38 = vector.load %arg6[%c0_17, %c0_18, %c0_19] : memref<1x4x128xf32, #tpu.memory_space<vmem>>, vector<1x4x128xf32>
    %39 = vector.extract_strided_slice %28 {offsets = [0, 0, 0], sizes = [1, 4, 128], strides = [1, 1, 1]} : vector<1x4x256xf32> to vector<1x4x128xf32>
    %40 = vector.extract_strided_slice %28 {offsets = [0, 0, 128], sizes = [1, 4, 128], strides = [1, 1, 1]} : vector<1x4x256xf32> to vector<1x4x128xf32>
    %41 = arith.addf %39, %40 : vector<1x4x128xf32>
    %42 = arith.addf %38, %41 : vector<1x4x128xf32>
    %c0_20 = arith.constant 0 : index
    %c0_21 = arith.constant 0 : index
    %c0_22 = arith.constant 0 : index
    %43 = vector.load %arg6[%c0_20, %c0_21, %c0_22] : memref<1x4x128xf32, #tpu.memory_space<vmem>>, vector<1x4x128xf32>
    tpu.vector_store %arg6[%c0_20, %c0_21, %c0_22], %42 {strides = array<i32>} : memref<1x4x128xf32, #tpu.memory_space<vmem>>, vector<1x4x128xf32>,
    %c0_23 = arith.constant 0 : index
    %c0_24 = arith.constant 0 : index
    %c0_25 = arith.constant 0 : index
    %44 = vector.load %arg7[%c0_23, %c0_24, %c0_25] : memref<1x4x128xf32, #tpu.memory_space<vmem>>, vector<1x4x128xf32>
    %45 = vector.extract_strided_slice %31 {offsets = [0, 0, 0], sizes = [1, 4, 128], strides = [1, 1, 1]} : vector<1x4x256xf32> to vector<1x4x128xf32>
    %46 = vector.extract_strided_slice %31 {offsets = [0, 0, 128], sizes = [1, 4, 128], strides = [1, 1, 1]} : vector<1x4x256xf32> to vector<1x4x128xf32>
    %47 = arith.addf %45, %46 : vector<1x4x128xf32>
    %48 = arith.addf %44, %47 : vector<1x4x128xf32>
    %c0_26 = arith.constant 0 : index
    %c0_27 = arith.constant 0 : index
    %c0_28 = arith.constant 0 : index
    %49 = vector.load %arg7[%c0_26, %c0_27, %c0_28] : memref<1x4x128xf32, #tpu.memory_space<vmem>>, vector<1x4x128xf32>
    tpu.vector_store %arg7[%c0_26, %c0_27, %c0_28], %48 {strides = array<i32>} : memref<1x4x128xf32, #tpu.memory_space<vmem>>, vector<1x4x128xf32>,
    return
  }
  func.func @transform_0(%arg0: i32, %arg1: i32, %arg2: i32) -> (i32, i32, i32) {
    %c1_i32 = arith.constant 1 : i32
    %0 = arith.muli %arg1, %c1_i32 : i32
    %1 = arith.addi %0, %arg2 : i32
    %c0_i32 = arith.constant 0 : i32
    %2 = arith.minsi %1, %c0_i32 : i32
    %c0_i32_0 = arith.constant 0 : i32
    %c0_i32_1 = arith.constant 0 : i32
    return %arg0, %c0_i32_0, %2 : i32, i32, i32
  }
  func.func @transform_1(%arg0: i32, %arg1: i32, %arg2: i32) -> (i32, i32, i32) {
    %c1_i32 = arith.constant 1 : i32
    %0 = arith.muli %arg1, %c1_i32 : i32
    %1 = arith.addi %0, %arg2 : i32
    %c0_i32 = arith.constant 0 : i32
    %2 = arith.minsi %1, %c0_i32 : i32
    %c0_i32_0 = arith.constant 0 : i32
    %c0_i32_1 = arith.constant 0 : i32
    return %arg0, %c0_i32_0, %2 : i32, i32, i32
  }
  func.func @transform_2(%arg0: i32, %arg1: i32, %arg2: i32) -> (i32, i32, i32) {
    %c1_i32 = arith.constant 1 : i32
    %0 = arith.muli %arg0, %c1_i32 : i32
    %1 = arith.addi %0, %arg1 : i32
    %c0_i32 = arith.constant 0 : i32
    %c0_i32_0 = arith.constant 0 : i32
    %c0_i32_1 = arith.constant 0 : i32
    return %1, %c0_i32, %c0_i32_0 : i32, i32, i32
  }
  func.func @transform_3(%arg0: i32, %arg1: i32, %arg2: i32) -> (i32, i32, i32) {
    %c1_i32 = arith.constant 1 : i32
    %0 = arith.muli %arg0, %c1_i32 : i32
    %1 = arith.addi %0, %arg1 : i32
    %c0_i32 = arith.constant 0 : i32
    %c0_i32_0 = arith.constant 0 : i32
    %c0_i32_1 = arith.constant 0 : i32
    return %1, %c0_i32, %c0_i32_0 : i32, i32, i32
  }
  func.func @transform_4(%arg0: i32, %arg1: i32, %arg2: i32) -> (i32, i32, i32) {
    %c1_i32 = arith.constant 1 : i32
    %0 = arith.muli %arg0, %c1_i32 : i32
    %1 = arith.addi %0, %arg1 : i32
    %c0_i32 = arith.constant 0 : i32
    %c0_i32_0 = arith.constant 0 : i32
    %c0_i32_1 = arith.constant 0 : i32
    return %1, %c0_i32, %c0_i32_0 : i32, i32, i32
  }
}

</mosaic_0001>

<bundles_post_ra>
// kernel: tpu_custom_call.1
= control target key start
LH: loop header
LB: loop body
LE: loop exit
PB: predicated region body
PF: predicated region fallthrough
CT: control target
= control target key end

     0   :  { %s1369_s0 = inlined_call_operand.hbm [shape: s32[2,1,256], index: 0, kind: input, shape index: {}]   ;;  %s1370_s1 = inlined_call_operand.hbm [shape: f32[2,4,256], index: 1, kind: input, shape index: {}]   ;;  %s1371_s2 = inlined_call_operand.hbm [shape: f32[2,1,128], index: 2, kind: output, shape index: {0}]   ;;  %s1372_s3 = inlined_call_operand.hbm [shape: f32[2,4,128], index: 3, kind: output, shape index: {1}]   ;;  %s1373_s4 = inlined_call_operand.hbm [shape: f32[2,4,128], index: 4, kind: output, shape index: {2}]  }
   0x1   :  { %1377 = sst [smem:[#allocation15_spill]] %s1369_s0 }
   0x2   :  { %1378 = sst [smem:[#allocation16_spill]] %s1370_s1 }
   0x3   :  { %10 = vsyncpa [#allocation3], 0 }
   0x4   :  { %12 = vsyncpa [#allocation3 + $0x1], 0 }
   0x5   :  { %13 = vsyncpa [#allocation6], 0 }
   0x6   :  { %15 = vsyncpa [#allocation6 + $0x1], 0 }
   0x7   :  { %16 = vsyncpa [#allocation4], 0 }
   0x8   :  { %18 = vsyncpa [#allocation4 + $0x1], 0 }
   0x9   :  { %19 = vsyncpa [#allocation9], 0 }
   0xa   :  { %21 = vsyncpa [#allocation9 + $0x1], 0  ;;  %s1032_s15 = smov 0   ;;  %s1034_s16 = smov 0  }
   0xb   :  { %s1036_s17 = smov 0   ;;  %s1038_s18 = smov 0  }
   0xc   :  { %s1040_s19 = smov 0   ;;  %s1042_s20 = smov 0  }
   0xd LB: > { %s1063_s21 = sadd.s32 4294967295, %s999_s20   ;;  %s1375_s22 = sadd.s32 4294967294, %s999_s20   ;;  %s999_s20 = sphi %s1042_s20, %s27_s20   ;;  %s995_s19 = sphi %s1040_s19, %s1399_s19   ;;  %s991_s18 = sphi %s1038_s18, %s1398_s18   ;;  %s987_s17 = sphi %s1036_s17, %s1397_s17   ;;  %s983_s16 = sphi %s1034_s16, %s1396_s16   ;;  %s979_s15 = sphi %s1032_s15, %s1395_s15  }
   0xe   : > { %s46_s23 = sadd.s32 1, %s995_s19  ;;  %s61_s24 = sadd.s32 1, %s987_s17 }
   0xf   : > { %p48_p0 = scmp.ge.s32.totalorder %s46_s23, 2  ;;  %p68_p1 = scmp.ne.s32.totalorder %s987_s17, %s983_s16 }
  0x10   : > { %p69_p2 = scmp.eq.s32.totalorder %s999_s20, 0  ;;  %p74_p3 = scmp.ne.s32.totalorder %s983_s16, %s979_s15 }
  0x11   : > { %s1401_s23 = smov (%p48_p0, %s46_s23), 0  ;;  %p75_p5 = scmp.eq.s32.totalorder %s1063_s21, 0 }
  0x12   : > { %p1075_p4 = por %p69_p2, %p68_p1  ;;  %s56_s26 = ssub.s32 %s995_s19, %s1401_s23 }
  0x13   : > { %p134_p6 = scmp.eq.s32.totalorder %s1063_s21, 1  ;;  %p59_p7 = scmp.eq.s32.totalorder %s56_s26, 0 }
  0x14   : > { %p1083_p8 = por %p75_p5, %p74_p3  ;;  %p140_p10 = scmp.eq.s32.totalorder %s1375_s22, 1 }
  0x15   : > { %p1087_p9 = por %p134_p6, %p68_p1  ;;  %p731_p13 = scmp.lt.s32.totalorder %s999_s20, 2 }
  0x16   : > { %s1380_s27 = scalar_select %p1083_p8, 1, 0 }
  0x17   : > { %s1381_s28 = scalar_select %p1087_p9, 1, 0 }
  0x18   : > { %s1094_s29 = scalar_select %p59_p7, %s987_s17, %s61_s24  }
  0x19   : > { %p1096_p11 = por %p140_p10, %p74_p3  ;;  %s1103_s5 = sand.u32 1, %s987_s17  }
  0x1a   : > { %s682_s6 = sshll.u32 %s1103_s5, 1  ;;  %s702_s7 = sshll.u32 %s995_s19, 5 }
  0x1b   : > { %s1382_s30 = scalar_select %p1096_p11, 1, 0 }
  0x1c   : > { %s1383_s0 = sld [smem:[#allocation15_spill]]  ;;  %s220_s11 = scalar_lea.vmem [#allocation2], %s682_s6 }
  0x1d   : > { %s233_s12 = sshll.u32 %s220_s11, 4  ;;  %p1116_p0 = pnand %p731_p13, %p1075_p4  ;;  %s1112_s12 = int_to_ptr.vmem [resolvable:$true] %s233_s12 }
  0x1e   : > { %s217_s14 = scalar_lea.sflag [#allocation3], %s1103_s5 }
  0x1f   : > { %p795_p5 = pneg %p1116_p0 }
  0x22   : > { %s1110_s10 = scalar_lea.hbm %s1383_s0, %s702_s7  ;;  %s798_s25 = scalar_lea.hbm %s1383_s0, 64 }
  0x23   : > { %s793_s24 = scalar_lea.hbm %s1110_s10, 32  ;;  %p799_p4 = scmp.lt.u32.totalorder %s1110_s10, %s1383_s0 }
  0x24   : > { %p794_p3 = scmp.ne.s32.totalorder %s1110_s10, %s793_s24  ;;  %p800_p10 = scmp.lt.u32.totalorder %s798_s25, %s793_s24 }
  0x25   : > { %p802_p12 = scmp.lt.u32.totalorder %s793_s24, %s1110_s10 }
  0x26   : > { %p796_p6 = pnand %p795_p5, %p794_p3  ;;  %p801_p13 = por %p800_p10, %p799_p4 }
  0x28   : > { %p797_p7 = pneg %p796_p6  ;;  %p803_p1 = por %p802_p12, %p801_p13 }
  0x2a   : > { %p804_p2 = pnand %p803_p1, %p797_p7 }
  0x2c   : > { %807 = shalt.err (!%p804_p2)
}
  0x2d   : > { %s808_s9 = scalar_lea.vmem %s1112_s12, 32  ;;  %s1001_s11 = smov [#allocation2]  }
  0x2e   : > { %p809_p3 = scmp.ne.s32.totalorder %s1112_s12, %s808_s9  ;;  %s813_s26 = sshll.u32 %s1001_s11, 4  ;;  %s814_s26 = int_to_ptr.vmem [resolvable:$false] %s813_s26 }
  0x2f   : > { %s815_s6 = scalar_lea.vmem %s814_s26, 64  ;;  %p816_p9 = scmp.lt.s32.totalorder %s1112_s12, %s814_s26 }
  0x30   : > { %p811_p6 = pnand %p809_p3, %p795_p5  ;;  %p817_p4 = scmp.lt.s32.totalorder %s815_s6, %s808_s9 }
  0x32   : > { %p812_p11 = pneg %p811_p6  ;;  %p818_p10 = por %p817_p4, %p816_p9 }
  0x34   : > { %p819_p12 = pnand %p818_p10, %p812_p11 }
  0x36   : > { %822 = shalt.err (!%p819_p12)
}
  0x37   : > { %717 = dma.hbm_to_vmem [thread:$0]  (!%p1116_p0), %s1110_s10, 32, %s1112_s12, %s217_s14  }
  0x38   : > { %p1385_p1 = scmp.lt.s32.totalorder %s999_s20, 3  ;;  %p1386_p2 = scmp.ge.s32.totalorder %s999_s20, 1 }
  0x39   : > { %s685_s25 = sshll.u32 %s1103_s5, 3  ;;  %s703_s7 = sshll.u32 %s995_s19, 7 }
  0x3a   : > { %p1152_p7 = pnand %p1386_p2, %p1385_p1  ;;  %s1388_s1 = sld [smem:[#allocation16_spill]] }
  0x3b   : > { %s244_s26 = scalar_lea.vmem [#allocation5], %s685_s25  ;;  %s241_s10 = scalar_lea.sflag [#allocation6], %s1103_s5 }
  0x3c   : > { %s1387_s24 = scalar_select %p1152_p7, 1, 0 }
  0x3d   : > { %s257_s6 = sshll.u32 %s244_s26, 4  ;;  %s258_s6 = int_to_ptr.vmem [resolvable:$true] %s257_s6 }
  0x40   : > { %s1161_s11 = scalar_lea.hbm %s1388_s1, %s703_s7  ;;  %s828_s8 = scalar_lea.hbm %s1388_s1, 256 }
  0x41   : > { %s823_s12 = scalar_lea.hbm %s1161_s11, 128  ;;  %p829_p3 = scmp.lt.u32.totalorder %s1161_s11, %s1388_s1 }
  0x42   : > { %p824_p9 = scmp.ne.s32.totalorder %s1161_s11, %s823_s12  ;;  %p830_p6 = scmp.lt.u32.totalorder %s828_s8, %s823_s12 }
  0x43   : > { %p832_p10 = scmp.lt.u32.totalorder %s823_s12, %s1161_s11 }
  0x44   : > { %p826_p11 = pnand %p824_p9, %p795_p5  ;;  %p831_p4 = por %p830_p6, %p829_p3 }
  0x46   : > { %p827_p13 = pneg %p826_p11  ;;  %p833_p12 = por %p832_p10, %p831_p4 }
  0x48   : > { %p834_p1 = pnand %p833_p12, %p827_p13 }
  0x4a   : > { %837 = shalt.err (!%p834_p1)
}
  0x4b   : > { %s838_s5 = scalar_lea.vmem %s258_s6, 128  ;;  %s1002_s25 = smov [#allocation5]  }
  0x4c   : > { %p839_p2 = scmp.ne.s32.totalorder %s258_s6, %s838_s5  ;;  %s843_s22 = sshll.u32 %s1002_s25, 4  ;;  %s844_s22 = int_to_ptr.vmem [resolvable:$false] %s843_s22 }
  0x4d   : > { %s845_s26 = scalar_lea.vmem %s844_s22, 256  ;;  %p846_p8 = scmp.lt.s32.totalorder %s258_s6, %s844_s22 }
  0x4e   : > { %p841_p9 = pnand %p839_p2, %p795_p5  ;;  %p847_p7 = scmp.lt.s32.totalorder %s845_s26, %s838_s5 }
  0x50   : > { %p842_p11 = pneg %p841_p9  ;;  %p848_p3 = por %p847_p7, %p846_p8 }
  0x52   : > { %p849_p6 = pnand %p848_p3, %p842_p11 }
  0x54   : > { %852 = shalt.err (!%p849_p6)
}
  0x55   : > { %720 = dma.hbm_to_vmem [thread:$0]  (!%p1116_p0), %s1161_s11, 128, %s258_s6, %s241_s10  }
  0x56   : > { %p1389_p13 = scmp.ne.s32.totalorder %s1387_s24, 0 }
  0x57   : > { %s1186_s12 = sand.u32 (!%p1389_p13), 1, %s983_s16   ;;  %p1390_p8 = scmp.ne.s32.totalorder (!%p1389_p13), %s1380_s27, 0 }
  0x58   : > { %266 = sbr.rel (%p1389_p13) target bundleno = 229 (0xe5), region = 28  ;;  %s689_s14 = sshll.u32 (!%p1389_p13), %s1186_s12, 1 }
  0x59   : > { %s269_s8 = scalar_lea.sflag (!%p1389_p13), [#allocation3], %s1186_s12  ;;  %s1190_s7 = scalar_lea.vmem (!%p1389_p13), [#allocation2], %s689_s14 }
  0x5f   : > { %962 = dma.done.wait (%p1390_p8), %s269_s8, 32  }
  0x60   : > { %964 = vsyncadd (%p1390_p8), %s269_s8, 4294967264  ;;  %s690_s13 = sshll.u32 %s1186_s12, 3  ;;  %s278_s24 = scalar_lea.sflag [#allocation6], %s1186_s12 }
  0x61   : > { %s281_s11 = scalar_lea.vmem [#allocation5], %s690_s13 }
  0x62   : > { %966 = dma.done.wait (%p1390_p8), %s278_s24, 128  }
  0x63   : > { %968 = vsyncadd (%p1390_p8), %s278_s24, 4294967168  ;;  %s691_s6 = sshll.u32 %s1186_s12, 2  ;;  %s1204_s10 = scalar_lea.vmem [#allocation7], %s1186_s12  ;;  %v1003_v0 = vmov 0.0   ;;  %vm343_vm0 = vcmask 1043456   ;;  %v338_v1 = vld [vmem:[%s281_s11] sm:$0xff]  ;;  %v397_v16 = vlaneseq }
  0x64   : > { %335 = vst [vmem:[%s1204_s10] sm:$0x1] %v1003_v0  ;;  %s1208_s9 = scalar_lea.vmem [#allocation8], %s691_s6  ;;  %s1212_s5 = scalar_lea.vmem [#allocation10], %s691_s6  ;;  %v341_v2 = vcombine.high %v338_v1, %v338_v1  ;;  %v344_v3 = vsel %vm343_vm0, %v338_v1, -inf  ;;  %v339_v23 = vld [vmem:[%s1190_s7] sm:$0x3] }
  0x65   : > { %336 = vst [vmem:[%s1208_s9] sm:$0xf] %v1003_v0  ;;  %337 = vst [vmem:[%s1212_s5] sm:$0xf] %v1003_v0  ;;  %v345_v4 = vrot.slane %v344_v3, 4  ;;  %v1218_v19 = vshrl.u32 %v397_v16, 7  ;;  %s508_s27 = sshll.u32 %s1212_s5, 4  ;;  %s460_s25 = sand.u32 1, %s1063_s21   ;;  %s1266_s27 = int_to_ptr.vmem [resolvable:$true] %s508_s27 }
  0x66   : > { %v351_v5 = vsel %vm343_vm0, %v341_v2, -inf  ;;  %s698_s22 = sshll.u32 %s991_s18, 6  ;;  %s494_s26 = sshll.u32 %s1208_s9, 4  ;;  %s1257_s26 = int_to_ptr.vmem [resolvable:$true] %s494_s26 }
  0x67   : > { %v346_v6 = vmax.f32 %v344_v3, %v345_v4  ;;  %v352_v7 = vrot.slane %v351_v5, 4  ;;  %v401_v22 = vsub.s32 0, %v1218_v19  ;;  %v405_v24 = vsub.s32 1, %v1218_v19  ;;  %s697_s14 = sshll.u32 %s991_s18, 4  ;;  %s480_s8 = sshll.u32 %s1204_s10, 4  ;;  %s1264_s8 = int_to_ptr.vmem [resolvable:$true] %s480_s8 }
  0x68   : > { %s1255_s13 = scalar_lea.hbm %s1372_s3, %s698_s22  ;;  %s1262_s6 = scalar_lea.hbm %s1371_s2, %s697_s14 }
  0x69   : > { %v347_v8 = vrot.slane %v346_v6, 2  ;;  %v353_v9 = vmax.f32 %v351_v5, %v352_v7  ;;  %v402_v25 = vrot.slane %v339_v23, %v401_v22  ;;  %v406_v26 = vrot.slane %v339_v23, %v405_v24  ;;  %s1273_s21 = scalar_lea.hbm %s1373_s4, %s698_s22  ;;  %s1276_s0 = scalar_lea.sflag [#allocation9], %s460_s25 }
  0x6a   : > { %s853_s1 = scalar_lea.vmem %s1257_s26, 64  ;;  %p1391_p5 = scmp.ne.s32.totalorder %s1381_s28, 0 }
  0x6b   : > { %v348_v10 = vmax.f32 %v346_v6, %v347_v8  ;;  %v354_v11 = vrot.slane %v353_v9, 2  ;;  %vm407_vm1 = vcmp.eq.s32.totalorder %v1218_v19, %v402_v25  ;;  %vm408_vm2 = vcmp.eq.s32.totalorder %v1218_v19, %v406_v26  ;;  %p854_p0 = scmp.ne.s32.totalorder %s1257_s26, %s853_s1  ;;  %s1004_s14 = smov [#allocation8]  }
  0x6c   : > { %v409_v28 = vsel %vm407_vm1, %v338_v1, 0.0  ;;  %v410_v31 = vsel %vm408_vm2, %v341_v2, 0.0  ;;  %v693_v57 = vsel %vm407_vm1, 1.0, %v1003_v0  ;;  %v694_v58 = vsel %vm408_vm2, 1.0, %v1003_v0  ;;  %s857_s24 = sshll.u32 %s1004_s14, 4  ;;  %s858_s24 = int_to_ptr.vmem [resolvable:$false] %s857_s24 }
  0x6d   : > { %v349_v12 = vrot.slane %v348_v10, 1  ;;  %v355_v13 = vmax.f32 %v353_v9, %v354_v11  ;;  %v411_v33 = vsel %vm343_vm0, %v409_v28, 0.0  ;;  %v418_v37 = vsel %vm343_vm0, %v410_v31, 0.0  ;;  %p855_p7 = pnand %p854_p0, %p1391_p5  ;;  %s859_s11 = scalar_lea.vmem %s858_s24, 128 }
  0x6e   : > { %v412_v38 = vrot.slane %v411_v33, 4  ;;  %v419_v41 = vrot.slane %v418_v37, 4  ;;  %v438_v3 = vcombine.low %v693_v57, %v694_v58  ;;  %p860_p10 = scmp.lt.s32.totalorder %s1257_s26, %s858_s24  ;;  %p861_p12 = scmp.lt.s32.totalorder %s859_s11, %s853_s1 }
  0x6f   : > { %v350_v14 = vmax.f32 %v348_v10, %v349_v12  ;;  %v356_v15 = vrot.slane %v355_v13, 1  ;;  %p856_p4 = pneg %p855_p7 }
  0x70   : > { %v413_v46 = vadd.f32 %v412_v38, %v411_v33  ;;  %v420_v49 = vadd.f32 %v419_v41, %v418_v37  ;;  %p862_p1 = por %p861_p12, %p860_p10 }
  0x71   : > { %v357_v17 = vmax.f32 %v355_v13, %v356_v15  ;;  %v441_v15 = vld [vmem:[%s1204_s10] sm:$0x1] }
  0x72   : > { %v414_v51 = vrot.slane %v413_v46, 2  ;;  %v421_v52 = vrot.slane %v420_v49, 2  ;;  %p863_p2 = pnand %p862_p1, %p856_p4 }
  0x73   : > { %v360_v18 = vcombine.low %v350_v14, %v357_v17 }
  0x74   : > { %v415_v53 = vadd.f32 %v414_v51, %v413_v46  ;;  %v422_v54 = vadd.f32 %v421_v52, %v420_v49 }
  0x75   : > { %v362_v20 = vsub.f32 %v338_v1, %v360_v18 }
  0x76   : > { %v416_v55 = vrot.slane %v415_v53, 1  ;;  %v423_v59 = vrot.slane %v422_v54, 1 }
  0x77   : > { %v363_v21 = vmul.f32 1.442695, %v362_v20  ;;  %v449_v20 = vld [vmem:[%s1212_s5] sm:$0xf] }
  0x78   : > { %v417_v63 = vadd.f32 %v416_v55, %v415_v53  ;;  %v424_v6 = vadd.f32 %v423_v59, %v422_v54 }
  0x79   : > { %783 = vpow2.f32 %v363_v21 }
  0x83   : > { %v784_v27 = vpop.eup %783 }
  0x84   : > { %v366_v29 = vcombine.high %v784_v27, %v784_v27  ;;  %v368_v30 = vsel %vm343_vm0, %v784_v27, 0.0 }
  0x85   : > { %v369_v32 = vrot.slane %v368_v30, 4 }
  0x86   : > { %v375_v34 = vsel %vm343_vm0, %v366_v29, 0.0 }
  0x87   : > { %v370_v35 = vadd.f32 %v369_v32, %v368_v30  ;;  %v376_v36 = vrot.slane %v375_v34, 4 }
  0x89   : > { %v371_v39 = vrot.slane %v370_v35, 2  ;;  %v377_v40 = vadd.f32 %v376_v36, %v375_v34 }
  0x8b   : > { %v372_v42 = vadd.f32 %v371_v39, %v370_v35  ;;  %v378_v43 = vrot.slane %v377_v40, 2 }
  0x8d   : > { %v373_v44 = vrot.slane %v372_v42, 1  ;;  %v379_v45 = vadd.f32 %v378_v43, %v377_v40 }
  0x8f   : > { %v374_v47 = vadd.f32 %v373_v44, %v372_v42  ;;  %v380_v48 = vrot.slane %v379_v45, 1 }
  0x91   : > { %v381_v50 = vadd.f32 %v380_v48, %v379_v45  ;;  %785 = vrcp.f32 %v374_v47 }
  0x92   : > { %787 = vlog2.f32 %v374_v47 }
  0x93   : > { %789 = vrcp.f32 %v381_v50 }
  0x94   : > { %791 = vlog2.f32 %v381_v50 }
  0x9b   : > { %v786_v56 = vpop.eup %785 }
  0x9c   : > { %v788_v60 = vpop.eup %787 }
  0x9d   : > { %v790_v61 = vpop.eup %789  ;;  %v392_v62 = vmul.f32 0.6931472, %v788_v60 }
  0x9e   : > { %v792_v1 = vpop.eup %791  ;;  %v388_v2 = vcombine.low %v786_v56, %v790_v61 }
  0x9f   : > { %v394_v4 = vmul.f32 0.6931472, %v792_v1  ;;  %v395_v5 = vadd.f32 %v392_v62, %v350_v14  ;;  %v445_v14 = vld [vmem:[%s1208_s9] sm:$0xf] }
  0xa0   : > { %v390_v7 = vmul.f32 %v784_v27, %v388_v2 }
  0xa1   : > { %v396_v8 = vadd.f32 %v394_v4, %v357_v17  ;;  %v425_v0 = vsub.f32 %v395_v5, %v417_v63 }
  0xa2   : > { %v428_v9 = vcombine.high %v390_v7, %v390_v7  ;;  %v430_v10 = vsel %vm407_vm1, %v390_v7, 0.0  ;;  %v440_v11 = vadd.f32 %v438_v3, %v390_v7 }
  0xa3   : > { %v426_v12 = vsub.f32 %v396_v8, %v424_v6 }
  0xa4   : > { %v431_v13 = vsel %vm408_vm2, %v428_v9, 0.0  ;;  %v451_v16 = vrot.slane %v440_v11, 4 }
  0xa5   : > { %v446_v17 = vadd.f32 %v431_v13, %v430_v10  ;;  %v442_v18 = vadd.f32 %v426_v12, %v425_v0 }
  0xa6   : > { %v453_v21 = vadd.f32 %v451_v16, %v440_v11 }
  0xa7   : > { %v447_v19 = vadd.f32 %v446_v17, %v445_v14  ;;  %v443_v22 = vadd.f32 %v442_v18, %v441_v15 }
  0xa8   : > { %v454_v23 = vadd.f32 %v453_v21, %v449_v20 }
  0xa9   : > { %448 = vst [vmem:[%s1208_s9] sm:$0xf] %v447_v19  ;;  %444 = vst [vmem:[%s1204_s10] sm:$0x1] %v443_v22 }
  0xaa   : > { %455 = vst [vmem:[%s1212_s5] sm:$0xf] %v454_v23 }
  0xab   : > { %866 = shalt.err (!%p863_p2)
}
  0xac   : > { %s867_s10 = scalar_lea.hbm %s1255_s13, 64  ;;  %s871_s25 = scalar_lea.hbm %s1372_s3, 128 }
  0xad   : > { %p868_p9 = scmp.ne.s32.totalorder %s1255_s13, %s867_s10  ;;  %p872_p6 = scmp.lt.u32.totalorder %s1255_s13, %s1372_s3 }
  0xae   : > { %p873_p13 = scmp.lt.u32.totalorder %s871_s25, %s867_s10  ;;  %p875_p0 = scmp.lt.u32.totalorder %s867_s10, %s1255_s13 }
  0xaf   : > { %p869_p11 = pnand %p868_p9, %p1391_p5 }
  0xb0   : > { %p874_p8 = por %p873_p13, %p872_p6 }
  0xb1   : > { %p870_p3 = pneg %p869_p11 }
  0xb2   : > { %p876_p7 = por %p875_p0, %p874_p8 }
  0xb4   : > { %p877_p4 = pnand %p876_p7, %p870_p3 }
  0xb6   : > { %880 = shalt.err (!%p877_p4)
}
  0xb7   : > { %709 = dma.vmem_to_hbm [thread:$0]  (%p1391_p5), %s1257_s26, 64, %s1255_s13, %s1276_s0  }
  0xb8   : > { %s457_s1 = scalar_lea.sflag [#allocation4], %s1186_s12  ;;  %s881_s7 = scalar_lea.vmem %s1264_s8, 16 }
  0xb9   : > { %p882_p10 = scmp.ne.s32.totalorder %s1264_s8, %s881_s7  ;;  %s1005_s14 = smov [#allocation7]  }
  0xba   : > { %s885_s24 = sshll.u32 %s1005_s14, 4  ;;  %s886_s24 = int_to_ptr.vmem [resolvable:$false] %s885_s24 }
  0xbb   : > { %p883_p12 = pnand %p882_p10, %p1391_p5  ;;  %s887_s11 = scalar_lea.vmem %s886_s24, 32 }
  0xbc   : > { %p888_p2 = scmp.lt.s32.totalorder %s1264_s8, %s886_s24  ;;  %p889_p9 = scmp.lt.s32.totalorder %s887_s11, %s881_s7 }
  0xbd   : > { %p884_p1 = pneg %p883_p12 }
  0xbe   : > { %p890_p11 = por %p889_p9, %p888_p2 }
  0xc0   : > { %p891_p3 = pnand %p890_p11, %p884_p1 }
  0xc2   : > { %894 = shalt.err (!%p891_p3)
}
  0xc3   : > { %s895_s12 = scalar_lea.hbm %s1262_s6, 16  ;;  %s899_s10 = scalar_lea.hbm %s1371_s2, 32 }
  0xc4   : > { %p896_p6 = scmp.ne.s32.totalorder %s1262_s6, %s895_s12  ;;  %p900_p0 = scmp.lt.u32.totalorder %s1262_s6, %s1371_s2 }
  0xc5   : > { %p901_p7 = scmp.lt.u32.totalorder %s899_s10, %s895_s12  ;;  %p903_p10 = scmp.lt.u32.totalorder %s895_s12, %s1262_s6 }
  0xc6   : > { %p897_p13 = pnand %p896_p6, %p1391_p5 }
  0xc7   : > { %p902_p4 = por %p901_p7, %p900_p0 }
  0xc8   : > { %p898_p8 = pneg %p897_p13 }
  0xc9   : > { %p904_p12 = por %p903_p10, %p902_p4 }
  0xcb   : > { %p905_p1 = pnand %p904_p12, %p898_p8 }
  0xcd   : > { %908 = shalt.err (!%p905_p1)
}
  0xce   : > { %708 = dma.vmem_to_hbm [thread:$0]  (%p1391_p5), %s1264_s8, 16, %s1262_s6, %s457_s1  }
  0xcf   : > { %s909_s25 = scalar_lea.vmem %s1266_s27, 64  ;;  %s1006_s22 = smov [#allocation10]  }
  0xd0   : > { %p910_p2 = scmp.ne.s32.totalorder %s1266_s27, %s909_s25  ;;  %s913_s18 = sshll.u32 %s1006_s22, 4  ;;  %s914_s18 = int_to_ptr.vmem [resolvable:$false] %s913_s18 }
  0xd1   : > { %s915_s7 = scalar_lea.vmem %s914_s18, 128  ;;  %p916_p3 = scmp.lt.s32.totalorder %s1266_s27, %s914_s18 }
  0xd2   : > { %p911_p9 = pnand %p910_p2, %p1391_p5  ;;  %p917_p6 = scmp.lt.s32.totalorder %s915_s7, %s909_s25 }
  0xd4   : > { %p912_p11 = pneg %p911_p9  ;;  %p918_p13 = por %p917_p6, %p916_p3 }
  0xd6   : > { %p919_p8 = pnand %p918_p13, %p912_p11 }
  0xd8   : > { %922 = shalt.err (!%p919_p8)
}
  0xd9   : > { %s923_s8 = scalar_lea.hbm %s1273_s21, 64  ;;  %s927_s14 = scalar_lea.hbm %s1373_s4, 128 }
  0xda   : > { %p924_p0 = scmp.ne.s32.totalorder %s1273_s21, %s923_s8  ;;  %p928_p10 = scmp.lt.u32.totalorder %s1273_s21, %s1373_s4 }
  0xdb   : > { %p929_p12 = scmp.lt.u32.totalorder %s927_s14, %s923_s8  ;;  %p931_p2 = scmp.lt.u32.totalorder %s923_s8, %s1273_s21 }
  0xdc   : > { %p925_p7 = pnand %p924_p0, %p1391_p5 }
  0xdd   : > { %p930_p1 = por %p929_p12, %p928_p10 }
  0xde   : > { %p926_p4 = pneg %p925_p7 }
  0xdf   : > { %p932_p9 = por %p931_p2, %p930_p1 }
  0xe1   : > { %p933_p11 = pnand %p932_p9, %p926_p4 }
  0xe3   : > { %936 = shalt.err (!%p933_p11)
}
  0xe4   : > { %710 = dma.vmem_to_hbm [thread:$0]  (%p1391_p5), %s1266_s27, 64, %s1273_s21, %s1276_s0  }
  0xe5 PF: > { %s520_s12 = sand.u32 1, %s979_s15   ;;  %p1392_p3 = scmp.ne.s32.totalorder %s1382_s30, 0 }
  0xe6   : > { %p1393_p6 = scmp.ge.s32.totalorder %s999_s20, 2  ;;  %s521_s26 = scalar_lea.sflag [#allocation4], %s520_s12 }
  0xe8   : > { %p722_p13 = pnand %p1393_p6, %p1392_p3 }
  0xea   : > { %970 = dma.done.wait (!%p722_p13), %s521_s26, 16  }
  0xeb   : > { %972 = vsyncadd (!%p722_p13), %s521_s26, 4294967280  ;;  %s1394_s13 = sadd.s32 4294967294, %s999_s20  }
  0xec   : > { %s528_s10 = sand.u32 1, %s1394_s13  }
  0xed   : > { %s529_s9 = scalar_lea.sflag [#allocation9], %s528_s10 }
  0xee   : > { %974 = dma.done.wait (!%p722_p13), %s529_s9, 128  }
  0xef   : > { %976 = vsyncadd (!%p722_p13), %s529_s9, 4294967168  ;;  %s27_s20 = sadd.s32 1, %s999_s20   ;;  %s1395_s15 = smov %s983_s16 }
  0xf0   : > { %p24_p5 = scmp.ge.s32.totalorder %s27_s20, 4   ;;  %s1396_s16 = smov %s987_s17 }
  0xf1   : > { %s1397_s17 = smov %s1094_s29  ;;  %s1398_s18 = smov %s995_s19 }
  0xf2   : > { %s1399_s19 = smov %s1401_s23  ;;  %26 = sbr.rel (!%p24_p5) target bundleno = 13 (0xd), region = 122 }
  0xf9   :  { %543 = vsyncpa [#allocation3], 1 }
  0xfa   :  { %545 = vsyncpa [#allocation3 + $0x1], 1 }
  0xfb   :  { %546 = vsyncpa [#allocation6], 1 }
  0xfc   :  { %548 = vsyncpa [#allocation6 + $0x1], 1 }
  0xfd   :  { %549 = vsyncpa [#allocation4], 1 }
  0xfe   :  { %551 = vsyncpa [#allocation4 + $0x1], 1 }
  0xff   :  { %552 = vsyncpa [#allocation9], 1 }
 0x100   :  { %554 = vsyncpa [#allocation9 + $0x1], 1 }

</bundles_post_ra>
